<compile_context>
chip_gen: v6e
topology: v6e:2x2x1
jax: 0.10.0
libtpu: 0.0.40
codegen_flags: <defaults>
</compile_context>

<pallas_src>
import functools

import jax
import jax.numpy as jnp
from jax.experimental import pallas as pl
from jax.experimental.pallas import tpu as pltpu


# ----------------------------------------------------------------------------
# Irreps bookkeeping (re-implements e3nn's Irreps.sort() / Extract instructions)
# ----------------------------------------------------------------------------
def make_sort_plan(irreps_in):
    """irreps_in: list of (mul, (l, p)) with p in {+1, -1}.

    Returns (in_slices, out_slices, D) such that
      out[..., out_slices[j]] = x[..., in_slices[j]]
    reproduces `torch.cat(self.extr(x), dim=-1)` of sort_irreps.forward.
    """
    dims = [mul * (2 * l + 1) for mul, (l, p) in irreps_in]
    offsets = [0]
    for d in dims:
        offsets.append(offsets[-1] + d)

    # e3nn Irrep ordering: 0e, 0o, 1o, 1e, 2e, 2o, ...  key = (l, -p*(-1)**l)
    def ir_key(l, p):
        return (l, -p * ((-1) ** l))

    # stable sort; ties broken by original index (matches e3nn's sort on
    # (ir, index, mul) tuples)
    order = sorted(
        range(len(irreps_in)),
        key=lambda i: (ir_key(irreps_in[i][1][0], irreps_in[i][1][1]), i),
    )
    in_slices, out_slices = [], []
    out_off = 0
    for i in order:
        d = dims[i]
        in_slices.append((offsets[i], d))
        out_slices.append((out_off, d))
        out_off += d
    return tuple(in_slices), tuple(out_slices), offsets[-1]


def coalesce_plan(in_slices, out_slices):
    """Merge adjacent slice pairs that are contiguous in both input and output.

    Returns a tuple of (in_start, out_start, length) segments in output order.
    """
    merged = []
    for (istart, d), (ostart, _d) in zip(in_slices, out_slices):
        if merged:
            mi, mo, md = merged[-1]
            if mi + md == istart and mo + md == ostart:
                merged[-1] = (mi, mo, md + d)
                continue
        merged.append((istart, ostart, d))
    return tuple(merged)


# ----------------------------------------------------------------------------
# Pallas kernel: static column-segment permutation over a row tile
# ----------------------------------------------------------------------------
def _sort_irreps_kernel(x_ref, o_ref, *, segments):
    # `segments` are in output order and tile exactly [0, D), so concatenating
    # the input slices builds the fully permuted tile in registers/VMEM and we
    # store it with ONE full-width, lane-dense store.  Per-segment stores would
    # each be a masked vst.msk on non-128-multiple widths; this way the shuffle
    # rides the XLU slot while the single vector-store slot stays unmasked.
    x = x_ref[...]
    o_ref[...] = jnp.concatenate(
        [x[:, i:i + d] for (i, _o, d) in segments], axis=-1)


# ----------------------------------------------------------------------------
# Tiling / wrapper
# ----------------------------------------------------------------------------
def _round_up(x, m):
    return ((x + m - 1) // m) * m


def _sublane(itemsize):
    # sublane multiple: 8 rows for f32, 16 for bf16, 32 for int8
    return max(8, 32 // max(1, itemsize))


def _tpu_info():
    """Returns (vmem_capacity_bytes, num_tensorcores_per_chip)."""
    vmem_cap = 64 << 20  # conservative default (v7x)
    num_tc = None
    try:
        info = pltpu.get_tpu_info()
        vmem_cap = int(info.vmem_capacity_bytes)
        for attr in ("num_cores", "tensor_cores_per_chip",
                     "num_tensorcores", "cores_per_chip"):
            v = getattr(info, attr, None)
            if v is not None:
                num_tc = int(v)
                break
    except Exception:
        pass
    if num_tc is None:
        # Heuristic: 64 MiB-per-TC parts (v7x) have 2 TCs; 128 MiB parts
        # (v5e/v6e) have 1.  Only affects tiling, never correctness.
        num_tc = 2 if vmem_cap <= (64 << 20) else 1
    return vmem_cap, num_tc


def _pick_tile_n(n_rows, d, itemsize, vmem_cap, num_tc):
    sublane = _sublane(itemsize)
    row_bytes = max(1, d * itemsize)

    # Byte-based tile cap: big enough to amortize the ~0.35us/step overhead,
    # small enough that in+out double-buffered tiles (+ the concat temp) fit
    # comfortably: ~12 MiB/tile on 64 MiB-VMEM chips, ~32 MiB on 128 MiB chips.
    tile_bytes_cap = (12 << 20) if vmem_cap <= (64 << 20) else (32 << 20)
    cap_rows = max(sublane, (tile_bytes_cap // row_bytes) // sublane * sublane)

    # Multi-TensorCore chips (v7x): keep >= 2 grid blocks per core so each core
    # still gets prefetch/writeback overlap.  Single-TC chips (v5e/v6e): prefer
    # the largest tile that fits — splitting buys nothing there.
    if num_tc > 1 and n_rows >= 4 * sublane:
        per_block = _round_up(pl.cdiv(n_rows, 2 * num_tc), sublane)
        cap_rows = min(cap_rows, max(sublane, per_block))

    if cap_rows >= n_rows:
        # Single block spanning the full row extent (always a legal block
        # shape: it equals the full array dim) -> no boundary masking at all.
        return n_rows
    return cap_rows


def sort_irreps_forward(x, irreps_in, *, force_pallas=None,
                        min_bytes_for_pallas=1 << 20,
                        donate_input=False, tile_n_override=None):
    """Pallas implementation of sort_irreps.forward (channel-last permutation)."""
    in_slices, out_slices, D = make_sort_plan(irreps_in)
    assert x.shape[-1] == D, f"last dim must be {D}, got {x.shape[-1]}"
    segments = coalesce_plan(in_slices, out_slices)

    # identity permutation: no data movement at all
    if len(segments) == 1 and segments[0] == (0, 0, D):
        return x

    itemsize = jnp.dtype(x.dtype).itemsize
    use_pallas = force_pallas
    if use_pallas is None:
        # dispatch on total bytes moved, not D: tiny calls can't amortize the
        # pallas_call launch cost; XLA's fused slice/concat handles them fine.
        use_pallas = (x.size * itemsize) >= min_bytes_for_pallas
    if not use_pallas:
        return jnp.concatenate(
            [x[..., i:i + d] for (i, _o, d) in segments], axis=-1)

    orig_shape = x.shape
    x2 = x.reshape(-1, D)
    N = x2.shape[0]
    sublane = _sublane(itemsize)

    vmem_cap, num_tc = _tpu_info()
    if tile_n_override is not None:
        tile_n = int(tile_n_override)
        tile_n = N if tile_n >= N else max(sublane, (tile_n // sublane) * sublane)
    else:
        tile_n = _pick_tile_n(N, D, itemsize, vmem_cap, num_tc)

    # No padding / slicing: a cdiv grid on the unpadded array; Pallas masks the
    # partial boundary block, so HBM traffic is exactly one read + one write.
    grid = (pl.cdiv(N, tile_n),)

    # explicit scoped-VMEM budget: in+out double-buffered tiles + concat temp,
    # clamped at 75% of physical VMEM (never request the whole chip).
    live_bytes = 6 * tile_n * D * itemsize
    vmem_limit = int(min(max(live_bytes + (2 << 20), 16 << 20),
                         (vmem_cap * 3) // 4))

    kernel = functools.partial(_sort_irreps_kernel, segments=segments)
    out = pl.pallas_call(
        kernel,
        out_shape=jax.ShapeDtypeStruct((N, D), x2.dtype),
        grid=grid,
        in_specs=[pl.BlockSpec((tile_n, D), lambda i: (i, 0))],
        out_specs=pl.BlockSpec((tile_n, D), lambda i: (i, 0)),
        compiler_params=pltpu.CompilerParams(
            dimension_semantics=("parallel",),
            vmem_limit_bytes=vmem_limit,
        ),
        input_output_aliases=({0: 0} if donate_input else {}),
    )(x2)
    return out.reshape(orig_shape)


# Pure-JAX reference (mirrors torch.cat(self.extr(x), dim=-1))
def sort_irreps_forward_ref(x, irreps_in):
    in_slices, _, _ = make_sort_plan(irreps_in)
    return jnp.concatenate([x[..., s:s + d] for (s, d) in in_slices], axis=-1)


if __name__ == "__main__":
    key = jax.random.PRNGKey(0)
    k1, k2 = jax.random.split(key)

    # Case 1: "32x1o + 64x0e + 16x2e + 32x0o" -> D = 96 + 64 + 80 + 32 = 272
    irreps_a = [(32, (1, -1)), (64, (0, +1)), (16, (2, +1)), (32, (0, -1))]
    _, _, Da = make_sort_plan(irreps_a)
    xa = jax.random.normal(k1, (4, 64, Da), dtype=jnp.float32)

    out_a = jax.block_until_ready(sort_irreps_forward(xa, irreps_a, force_pallas=True))
    ref_a = sort_irreps_forward_ref(xa, irreps_a)
    assert out_a.shape == ref_a.shape and out_a.dtype == ref_a.dtype
    assert bool(jnp.array_equal(out_a, ref_a))

    # Case 2: ragged row count (N = 3*37 = 111, not a sublane multiple).  The
    # tile picker uses a single full-extent block here (block dim == array dim).
    irreps_b = [(2, (1, -1)), (3, (0, +1)), (1, (2, +1)), (2, (0, -1))]  # D = 16
    _, _, Db = make_sort_plan(irreps_b)
    xb = jax.random.normal(k2, (3, 37, Db), dtype=jnp.float32)

    out_b = jax.block_until_ready(sort_irreps_forward(xb, irreps_b, force_pallas=True))
    ref_b = sort_irreps_forward_ref(xb, irreps_b)
    assert bool(jnp.array_equal(out_b, ref_b))

    # Case 3: same ragged N with a small forced tile -> exercises the cdiv grid
    # boundary block (partial last block, no padding/slicing in the wrapper).
    out_c = jax.block_until_ready(
        sort_irreps_forward(xb, irreps_b, force_pallas=True, tile_n_override=32))
    assert bool(jnp.array_equal(out_c, ref_b))

    # Case 4: auto dispatch (tiny byte count -> XLA slice/concat path).
    out_d = jax.block_until_ready(sort_irreps_forward(xb, irreps_b))
    assert bool(jnp.array_equal(out_d, ref_b))

    print("KERNEL_OK")
</pallas_src>

<mosaic_0001>
module attributes {stable_mosaic.version = 11 : i64} {
  func.func @_sort_irreps_kernel(%arg0: i32, %arg1: memref<64x272xf32, #tpu.memory_space<vmem>>, %arg2: memref<64x272xf32, #tpu.memory_space<vmem>>) attributes {dimension_semantics = [#tpu.dimension_semantics<parallel>], iteration_bounds = array<i64: 4>, scalar_prefetch = 0 : i64, scratch_operands = 0 : i64, tpu.core_type = #tpu.core_type<tc>, window_params = [{transform_indices = @transform_0, window_bounds = array<i64: 64, 272>}, {transform_indices = @transform_1, window_bounds = array<i64: 64, 272>}]} {
    %c0 = arith.constant 0 : index
    %c0_0 = arith.constant 0 : index
    %0 = vector.load %arg1[%c0, %c0_0] : memref<64x272xf32, #tpu.memory_space<vmem>>, vector<64x272xf32>
    %1 = vector.extract_strided_slice %0 {offsets = [0, 96], sizes = [64, 64], strides = [1, 1]} : vector<64x272xf32> to vector<64x64xf32>
    %2 = vector.extract_strided_slice %0 {offsets = [0, 240], sizes = [64, 32], strides = [1, 1]} : vector<64x272xf32> to vector<64x32xf32>
    %3 = vector.extract_strided_slice %0 {offsets = [0, 0], sizes = [64, 96], strides = [1, 1]} : vector<64x272xf32> to vector<64x96xf32>
    %4 = vector.extract_strided_slice %0 {offsets = [0, 160], sizes = [64, 80], strides = [1, 1]} : vector<64x272xf32> to vector<64x80xf32>
    %5 = tpu.concatenate %1, %2, %3, %4 in 1 : vector<64x64xf32>, vector<64x32xf32>, vector<64x96xf32>, vector<64x80xf32> -> vector<64x272xf32>
    %c0_1 = arith.constant 0 : index
    %c0_2 = arith.constant 0 : index
    %6 = vector.load %arg2[%c0_1, %c0_2] : memref<64x272xf32, #tpu.memory_space<vmem>>, vector<64x272xf32>
    tpu.vector_store %arg2[%c0_1, %c0_2], %5 {strides = array<i32>} : memref<64x272xf32, #tpu.memory_space<vmem>>, vector<64x272xf32>,
    return
  }
  func.func @transform_0(%arg0: i32) -> (i32, i32) {
    %c0_i32 = arith.constant 0 : i32
    %c0_i32_0 = arith.constant 0 : i32
    return %arg0, %c0_i32 : i32, i32
  }
  func.func @transform_1(%arg0: i32) -> (i32, i32) {
    %c0_i32 = arith.constant 0 : i32
    %c0_i32_0 = arith.constant 0 : i32
    return %arg0, %c0_i32 : i32, i32
  }
}

</mosaic_0001>

<bundles_post_ra>
// kernel: tpu_custom_call.1
= control target key start
LH: loop header
LB: loop body
LE: loop exit
PB: predicated region body
PF: predicated region fallthrough
CT: control target
= control target key end

     0   :  { %s456_s6 = smov 0   ;;  %s622_s0 = inlined_call_operand.vmem [shape: f32[256,272], index: 0, kind: input, shape index: {}]   ;;  %s623_s1 = inlined_call_operand.vmem [shape: f32[256,272], index: 1, kind: output, shape index: {}]  }
   0x1 LB: > { %s412_s7 = sadd.s32 4294967295, %s441_s6   ;;  %p416_p0 = scmp.ge.s32.totalorder %s441_s6, 1  ;;  %s441_s6 = sphi %s456_s6, %s11_s6  }
   0x2   : > { %p89_p1 = scmp.lt.s32.totalorder %s441_s6, 5 }
   0x4   : > { %p90_p2 = pnand %p416_p0, %p89_p1 }
   0x5   : > { %s417_s8 = sshll.u32 (!%p90_p2), %s412_s7, 3  ;;  %s443_s13 = smov (!%p90_p2), 32  }
   0x6   : > { %93 = sbr.rel (%p90_p2) target bundleno = 210 (0xd2), region = 24  ;;  %p112_p3 = scmp.lt.s32.totalorder (!%p90_p2), %s417_s8, 31 }
   0x7   : > { %s444_s14 = smov (!%p90_p2), 80   ;;  %s445_s15 = smov (!%p90_p2), 96  }
   0xb   : > { %s625_s8 = smov (!%p112_p3, %s417_s8), 31  ;;  %vm331_vm0 = vcmask 130048   ;;  %vm254_vm1 = vcmask 654336   ;;  %vm197_vm2 = vcmask 261120   ;;  %vm303_vm3 = vcmask 523264  }
   0xc   : > { %s423_s9 = smul.u32 24, %s625_s8  ;;  %vm312_vm4 = vcmask 785408  }
   0xe   : > { %s472_s12 = scalar_lea.vmem %s622_s0, %s423_s9  ;;  %s503_s18 = scalar_lea.vmem %s623_s1, %s423_s9 }
   0xf   : > { %v128_v0 = vld [vmem:[%s472_s12 + $0x18] sm:$0xff]  ;;  %v125_v1 = vld [vmem:[%s472_s12] sm:$0xff]  ;;  %v126_v3 = vld [vmem:[%s472_s12 + $0x8] sm:$0xff] }
  0x10   : > { %169 = vrot.lane.b32.xlu1 %v128_v0, %s443_s13  ;;  %165 = vrot.lane.b32.xlu0 %v125_v1, %s443_s13  ;;  %v129_v2 = vld [vmem:[%s472_s12 + $0x20] sm:$0xff]  ;;  %v132_v4 = vld [vmem:[%s472_s12 + $0x38] sm:$0xff] }
  0x11   : > { %v131_v5 = vld [vmem:[%s472_s12 + $0x30] sm:$0xff]  ;;  %v134_v7 = vld [vmem:[%s472_s12 + $0x48] sm:$0xff]  ;;  %v137_v9 = vld [vmem:[%s472_s12 + $0x60] sm:$0xff] }
  0x12   : > { %v135_v6 = vld [vmem:[%s472_s12 + $0x50] sm:$0xff]  ;;  %v138_v8 = vld [vmem:[%s472_s12 + $0x68] sm:$0xff]  ;;  %v141_v10 = vld [vmem:[%s472_s12 + $0x80] sm:$0xff] }
  0x13   : > { %v140_v11 = vld [vmem:[%s472_s12 + $0x78] sm:$0xff]  ;;  %v143_v13 = vld [vmem:[%s472_s12 + $0x90] sm:$0xff]  ;;  %v146_v15 = vld [vmem:[%s472_s12 + $0xa8] sm:$0xff] }
  0x14   : > { %171 = vrot.lane.b32.xlu1 %v129_v2, %s443_s13  ;;  %167 = vrot.lane.b32.xlu0 %v126_v3, %s443_s13  ;;  %v144_v12 = vld [vmem:[%s472_s12 + $0x98] sm:$0xff]  ;;  %v147_v14 = vld [vmem:[%s472_s12 + $0xb0] sm:$0xff] }
  0x15   : > { %v127_v16 = vld [vmem:[%s472_s12 + $0x10] sm:$0xff]  ;;  %v130_v17 = vld [vmem:[%s472_s12 + $0x28] sm:$0xff]  ;;  %v133_v18 = vld [vmem:[%s472_s12 + $0x40] sm:$0xff] }
  0x16   : > { %v136_v19 = vld [vmem:[%s472_s12 + $0x58] sm:$0xff]  ;;  %v139_v20 = vld [vmem:[%s472_s12 + $0x70] sm:$0xff]  ;;  %v142_v21 = vld [vmem:[%s472_s12 + $0x88] sm:$0xff] }
  0x17   : > { %v145_v22 = vld [vmem:[%s472_s12 + $0xa0] sm:$0xff]  ;;  %v148_v23 = vld [vmem:[%s472_s12 + $0xb8] sm:$0xff] }
  0x18   : > { %175 = vrot.lane.b32.xlu1 %v132_v4, %s443_s13  ;;  %173 = vrot.lane.b32.xlu0 %v131_v5, %s443_s13 }
  0x1c   : > { %179 = vrot.lane.b32.xlu1 %v135_v6, %s443_s13  ;;  %177 = vrot.lane.b32.xlu0 %v134_v7, %s443_s13 }
  0x20   : > { %183 = vrot.lane.b32.xlu1 %v138_v8, %s443_s13  ;;  %181 = vrot.lane.b32.xlu0 %v137_v9, %s443_s13 }
  0x24   : > { %187 = vrot.lane.b32.xlu1 %v141_v10, %s443_s13  ;;  %185 = vrot.lane.b32.xlu0 %v140_v11, %s443_s13 }
  0x28   : > { %191 = vrot.lane.b32.xlu1 %v144_v12, %s443_s13  ;;  %189 = vrot.lane.b32.xlu0 %v143_v13, %s443_s13 }
  0x2c   : > { %195 = vrot.lane.b32.xlu1 %v147_v14, %s443_s13  ;;  %193 = vrot.lane.b32.xlu0 %v146_v15, %s443_s13 }
  0x30   : > { %224 = vrot.lane.b32.xlu1 %v127_v16, %s444_s14  ;;  %222 = vrot.lane.b32.xlu0 %v126_v3, %s444_s14 }
  0x34   : > { %228 = vrot.lane.b32.xlu1 %v130_v17, %s444_s14  ;;  %226 = vrot.lane.b32.xlu0 %v129_v2, %s444_s14 }
  0x38   : > { %232 = vrot.lane.b32.xlu1 %v133_v18, %s444_s14  ;;  %230 = vrot.lane.b32.xlu0 %v132_v4, %s444_s14 }
  0x3c   : > { %236 = vrot.lane.b32.xlu1 %v136_v19, %s444_s14  ;;  %234 = vrot.lane.b32.xlu0 %v135_v6, %s444_s14 }
  0x40   : > { %240 = vrot.lane.b32.xlu1 %v139_v20, %s444_s14  ;;  %238 = vrot.lane.b32.xlu0 %v138_v8, %s444_s14 }
  0x44   : > { %244 = vrot.lane.b32.xlu1 %v142_v21, %s444_s14  ;;  %242 = vrot.lane.b32.xlu0 %v141_v10, %s444_s14 }
  0x48   : > { %248 = vrot.lane.b32.xlu1 %v145_v22, %s444_s14  ;;  %246 = vrot.lane.b32.xlu0 %v144_v12, %s444_s14 }
  0x4c   : > { %252 = vrot.lane.b32.xlu1 %v148_v23, %s444_s14  ;;  %250 = vrot.lane.b32.xlu0 %v147_v14, %s444_s14 }
  0x50   : > { %273 = vrot.lane.b32.xlu1 %v128_v0, %s445_s15  ;;  %271 = vrot.lane.b32.xlu0 %v125_v1, %s445_s15 }
  0x54   : > { %277 = vrot.lane.b32.xlu1 %v134_v7, %s445_s15  ;;  %275 = vrot.lane.b32.xlu0 %v131_v5, %s445_s15 }
  0x58   : > { %281 = vrot.lane.b32.xlu1 %v140_v11, %s445_s15  ;;  %279 = vrot.lane.b32.xlu0 %v137_v9, %s445_s15 }
  0x5c   : > { %285 = vrot.lane.b32.xlu1 %v146_v15, %s445_s15  ;;  %283 = vrot.lane.b32.xlu0 %v143_v13, %s445_s15 }
  0x82   : > { %v170_v24 = vpop.permute.xlu1 %169  ;;  %v166_v25 = vpop.permute.xlu0 %165 }
  0x86   : > { %v172_v26 = vpop.permute.xlu1 %171  ;;  %v168_v27 = vpop.permute.xlu0 %167 }
  0x87   : > { %335 = vst.msk [vmem:[%s503_s18 + $0x28] sm:$0xff] %vm331_vm0, %v172_v26  ;;  %332 = vst.msk [vmem:[%s503_s18 + $0x10] sm:$0xff] %vm331_vm0, %v168_v27  ;;  %v199_v58 = vsel %vm197_vm2, %v170_v24, %v172_v26  ;;  %v198_v59 = vsel %vm197_vm2, %v166_v25, %v168_v27 }
  0x8a   : > { %v509_v28 = vpop.permute.xlu1 %175  ;;  %v174_v29 = vpop.permute.xlu0 %173 }
  0x8b   : > { %338 = vst.msk [vmem:[%s503_s18 + $0x40] sm:$0xff] %vm331_vm0, %v509_v28  ;;  %v200_v6 = vsel %vm197_vm2, %v174_v29, %v509_v28 }
  0x8e   : > { %v514_v30 = vpop.permute.xlu1 %179  ;;  %v178_v31 = vpop.permute.xlu0 %177 }
  0x8f   : > { %341 = vst.msk [vmem:[%s503_s18 + $0x58] sm:$0xff] %vm331_vm0, %v514_v30  ;;  %v201_v7 = vsel %vm197_vm2, %v178_v31, %v514_v30 }
  0x92   : > { %v519_v32 = vpop.permute.xlu1 %183  ;;  %v521_v33 = vpop.permute.xlu0 %181 }
  0x93   : > { %344 = vst.msk [vmem:[%s503_s18 + $0x70] sm:$0xff] %vm331_vm0, %v519_v32  ;;  %v202_v18 = vsel %vm197_vm2, %v521_v33, %v519_v32 }
  0x96   : > { %v526_v34 = vpop.permute.xlu1 %187  ;;  %v528_v35 = vpop.permute.xlu0 %185 }
  0x97   : > { %347 = vst.msk [vmem:[%s503_s18 + $0x88] sm:$0xff] %vm331_vm0, %v526_v34  ;;  %v203_v19 = vsel %vm197_vm2, %v528_v35, %v526_v34 }
  0x9a   : > { %v533_v36 = vpop.permute.xlu1 %191  ;;  %v535_v37 = vpop.permute.xlu0 %189 }
  0x9b   : > { %350 = vst.msk [vmem:[%s503_s18 + $0xa0] sm:$0xff] %vm331_vm0, %v533_v36 }
  0x9e   : > { %v540_v38 = vpop.permute.xlu1 %195  ;;  %v542_v39 = vpop.permute.xlu0 %193 }
  0x9f   : > { %353 = vst.msk [vmem:[%s503_s18 + $0xb8] sm:$0xff] %vm331_vm0, %v540_v38  ;;  %v205_v31 = vsel %vm197_vm2, %v542_v39, %v540_v38 }
  0xa2   : > { %v225_v40 = vpop.permute.xlu1 %224  ;;  %v223_v41 = vpop.permute.xlu0 %222 }
  0xa3   : > { %v255_v56 = vsel %vm254_vm1, %v223_v41, %v225_v40 }
  0xa4   : > { %v304_v0 = vsel %vm303_vm3, %v198_v59, %v255_v56 }
  0xa6   : > { %v229_v42 = vpop.permute.xlu1 %228  ;;  %v227_v43 = vpop.permute.xlu0 %226 }
  0xa7   : > { %v256_v57 = vsel %vm254_vm1, %v227_v43, %v229_v42 }
  0xa8   : > { %v305_v63 = vsel %vm303_vm3, %v199_v58, %v256_v57 }
  0xaa   : > { %v233_v44 = vpop.permute.xlu1 %232  ;;  %v231_v45 = vpop.permute.xlu0 %230 }
  0xab   : > { %v257_v60 = vsel %vm254_vm1, %v231_v45, %v233_v44 }
  0xac   : > { %v306_v12 = vsel %vm303_vm3, %v200_v6, %v257_v60 }
  0xae   : > { %v237_v46 = vpop.permute.xlu1 %236  ;;  %v235_v47 = vpop.permute.xlu0 %234 }
  0xaf   : > { %v258_v61 = vsel %vm254_vm1, %v235_v47, %v237_v46 }
  0xb0   : > { %v307_v11 = vsel %vm303_vm3, %v201_v7, %v258_v61 }
  0xb2   : > { %v241_v48 = vpop.permute.xlu1 %240  ;;  %v239_v49 = vpop.permute.xlu0 %238 }
  0xb3   : > { %v259_v8 = vsel %vm254_vm1, %v239_v49, %v241_v48 }
  0xb4   : > { %v308_v24 = vsel %vm303_vm3, %v202_v18, %v259_v8 }
  0xb6   : > { %v245_v50 = vpop.permute.xlu1 %244  ;;  %v243_v51 = vpop.permute.xlu0 %242 }
  0xb7   : > { %v260_v9 = vsel %vm254_vm1, %v243_v51, %v245_v50 }
  0xb8   : > { %v309_v23 = vsel %vm303_vm3, %v203_v19, %v260_v9 }
  0xba   : > { %v249_v52 = vpop.permute.xlu1 %248  ;;  %v247_v53 = vpop.permute.xlu0 %246 }
  0xbb   : > { %v261_v20 = vsel %vm254_vm1, %v247_v53, %v249_v52 }
  0xbe   : > { %v253_v54 = vpop.permute.xlu1 %252  ;;  %v251_v55 = vpop.permute.xlu0 %250 }
  0xbf   : > { %v262_v21 = vsel %vm254_vm1, %v251_v55, %v253_v54 }
  0xc2   : > { %v274_v62 = vpop.permute.xlu1 %273  ;;  %v272_v1 = vpop.permute.xlu0 %271 }
  0xc3   : > { %v314_v2 = vsel %vm312_vm4, %v305_v63, %v274_v62  ;;  %v322_v3 = vsel %vm303_vm3, %v274_v62, %v172_v26  ;;  %v313_v4 = vsel %vm312_vm4, %v304_v0, %v272_v1  ;;  %v321_v5 = vsel %vm303_vm3, %v272_v1, %v168_v27 }
  0xc4   : > { %333 = vst [vmem:[%s503_s18 + $0x18] sm:$0xff] %v314_v2  ;;  %334 = vst [vmem:[%s503_s18 + $0x20] sm:$0xff] %v322_v3 }
  0xc5   : > { %329 = vst [vmem:[%s503_s18] sm:$0xff] %v313_v4  ;;  %330 = vst [vmem:[%s503_s18 + $0x8] sm:$0xff] %v321_v5 }
  0xc6   : > { %v278_v10 = vpop.permute.xlu1 %277  ;;  %v276_v13 = vpop.permute.xlu0 %275 }
  0xc7   : > { %v316_v14 = vsel %vm312_vm4, %v307_v11, %v278_v10  ;;  %v324_v15 = vsel %vm303_vm3, %v278_v10, %v514_v30  ;;  %v315_v16 = vsel %vm312_vm4, %v306_v12, %v276_v13  ;;  %v323_v17 = vsel %vm303_vm3, %v276_v13, %v509_v28 }
  0xc8   : > { %339 = vst [vmem:[%s503_s18 + $0x48] sm:$0xff] %v316_v14  ;;  %340 = vst [vmem:[%s503_s18 + $0x50] sm:$0xff] %v324_v15  ;;  %v204_v30 = vsel %vm197_vm2, %v535_v37, %v533_v36 }
  0xc9   : > { %336 = vst [vmem:[%s503_s18 + $0x30] sm:$0xff] %v315_v16  ;;  %337 = vst [vmem:[%s503_s18 + $0x38] sm:$0xff] %v323_v17 }
  0xca   : > { %v282_v22 = vpop.permute.xlu1 %281  ;;  %v280_v25 = vpop.permute.xlu0 %279 }
  0xcb   : > { %v318_v26 = vsel %vm312_vm4, %v309_v23, %v282_v22  ;;  %v326_v27 = vsel %vm303_vm3, %v282_v22, %v526_v34  ;;  %v317_v28 = vsel %vm312_vm4, %v308_v24, %v280_v25  ;;  %v325_v29 = vsel %vm303_vm3, %v280_v25, %v519_v32 }
  0xcc   : > { %345 = vst [vmem:[%s503_s18 + $0x78] sm:$0xff] %v318_v26  ;;  %346 = vst [vmem:[%s503_s18 + $0x80] sm:$0xff] %v326_v27  ;;  %v311_v34 = vsel %vm303_vm3, %v205_v31, %v262_v21  ;;  %v310_v32 = vsel %vm303_vm3, %v204_v30, %v261_v20 }
  0xcd   : > { %342 = vst [vmem:[%s503_s18 + $0x60] sm:$0xff] %v317_v28  ;;  %343 = vst [vmem:[%s503_s18 + $0x68] sm:$0xff] %v325_v29 }
  0xce   : > { %v286_v33 = vpop.permute.xlu1 %285  ;;  %v284_v35 = vpop.permute.xlu0 %283 }
  0xcf   : > { %v320_v40 = vsel %vm312_vm4, %v311_v34, %v286_v33  ;;  %v328_v41 = vsel %vm303_vm3, %v286_v33, %v540_v38  ;;  %v319_v42 = vsel %vm312_vm4, %v310_v32, %v284_v35  ;;  %v327_v37 = vsel %vm303_vm3, %v284_v35, %v533_v36 }
  0xd0   : > { %351 = vst [vmem:[%s503_s18 + $0xa8] sm:$0xff] %v320_v40  ;;  %352 = vst [vmem:[%s503_s18 + $0xb0] sm:$0xff] %v328_v41 }
  0xd1   : > { %348 = vst [vmem:[%s503_s18 + $0x90] sm:$0xff] %v319_v42  ;;  %349 = vst [vmem:[%s503_s18 + $0x98] sm:$0xff] %v327_v37 }
  0xd2 PF: > { %s11_s6 = sadd.s32 1, %s441_s6  }
  0xd3   : > { %p8_p4 = scmp.ge.s32.totalorder %s11_s6, 6  }
  0xd5   :  { %10 = sbr.rel (!%p8_p4) target bundleno = 1 (0x1), region = 54 }

</bundles_post_ra>
